<compile_context>
chip_gen: v6e
topology: v6e:2x2x1
jax: 0.10.0
libtpu: 0.0.40
codegen_flags: <defaults>
</compile_context>

<pallas_src>
import jax
import jax.numpy as jnp
from jax.experimental import pallas as pl
from jax.experimental.pallas import tpu as pltpu


def _round_up(x: int, m: int) -> int:
    return ((x + m - 1) // m) * m


def _pick_batch_tile(B: int, *, max_tile: int = 1024, min_steps: int = 4) -> int:
    """Batch tile: multiple of 8 (8,128 sublane rule), <= max_tile, sized so the
    grid has >= min_steps steps when B allows (keeps >= 2 steps per TensorCore
    on v7x and amortizes the ~0.35 us/step pipeline overhead)."""
    bp = _round_up(max(B, 8), 8)
    tb = _round_up((bp + min_steps - 1) // min_steps, 8)
    return max(8, min(max_tile, tb, bp))


def _reparam_kernel(x_ref, eps_ref, w_ref, b_ref, z_ref, mu_ref, sigma_ref):
    """Fused mean/logvar heads: one (tb, D) @ (D, 2D) MXU matmul, f32 accumulate,
    lane-aligned slices for mu / sigma, then z = mu + eps * sigma."""
    D = mu_ref.shape[-1]
    out = jnp.dot(x_ref[...], w_ref[...], preferred_element_type=jnp.float32)
    out = out + b_ref[...].astype(jnp.float32)
    mu = out[:, :D]
    sigma = out[:, D:]
    z = mu + eps_ref[...].astype(jnp.float32) * sigma
    z_ref[...] = z.astype(z_ref.dtype)
    mu_ref[...] = mu.astype(mu_ref.dtype)
    sigma_ref[...] = sigma.astype(sigma_ref.dtype)


def fuse_reparam_params(w_mean, b_mean, w_logvar, b_logvar, *, matmul_dtype=None):
    """One-time weight fusion (hoisted out of the forward): pre-transpose the
    PyTorch (out, in) weights to (in, out) and concat the two heads along the
    output axis.  Call once at parameter-init / load time."""
    w_cat = jnp.concatenate([w_mean.T, w_logvar.T], axis=1)        # (D, 2D)
    b_cat = jnp.concatenate([b_mean, b_logvar]).reshape(1, -1)     # (1, 2D)
    if matmul_dtype is not None:
        w_cat = w_cat.astype(matmul_dtype)                         # bias stays f32
    return w_cat, b_cat


def reparametrisation_forward(encoded_x, w_cat, b_cat, *, eps=None, seed=0,
                              tb=None, out_dtype=None, matmul_dtype=None):
    """encoded_x: (B, D).  w_cat: (D, 2D) fused weights (from fuse_reparam_params).
    b_cat: (1, 2D) fused bias.  eps: optional (B, D) standard-normal samples;
    if None they are drawn (f32) from PRNGKey(seed) and streamed.
    Returns (z, mu, sigma), each (B, D)."""
    B, D = encoded_x.shape
    assert w_cat.shape == (D, 2 * D), "w_cat must be the fused (D, 2D) weight"
    assert b_cat.shape == (1, 2 * D), "b_cat must be the fused (1, 2D) bias"
    out_dtype = encoded_x.dtype if out_dtype is None else out_dtype

    if tb is None:
        tb = _pick_batch_tile(B)
    tb = max(8, _round_up(min(tb, _round_up(B, 8)), 8))
    Bp = _round_up(B, tb)                      # zero-pad ragged batches to a tile
    grid = (Bp // tb,)

    x = encoded_x
    if matmul_dtype is not None and x.dtype != matmul_dtype:
        x = x.astype(matmul_dtype)
    if eps is None:
        # eps always drawn in f32 (noise quality independent of input dtype).
        eps = jax.random.normal(jax.random.PRNGKey(seed), (B, D), jnp.float32)
    if Bp != B:
        x = jnp.pad(x, ((0, Bp - B), (0, 0)))
        eps = jnp.pad(eps, ((0, Bp - B), (0, 0)))

    # Raise the scoped-VMEM limit if the double-buffered per-step footprint
    # exceeds the v5e 16 MiB default (irrelevant at small tiles / D=128).
    isz_x = jnp.dtype(x.dtype).itemsize
    isz_e = jnp.dtype(eps.dtype).itemsize
    isz_o = jnp.dtype(out_dtype).itemsize
    isz_w = jnp.dtype(w_cat.dtype).itemsize
    per_step = (tb * D * (isz_x + isz_e + 3 * isz_o)
                + 2 * D * D * isz_w + 2 * D * jnp.dtype(b_cat.dtype).itemsize)
    vmem_needed = 2 * per_step                 # double buffering
    vmem_limit = None
    if vmem_needed > 16 * 1024 * 1024:
        vmem_limit = min(int(vmem_needed * 1.25), 100 * 1024 * 1024)

    compiler_params = pltpu.CompilerParams(
        dimension_semantics=("parallel",),
        vmem_limit_bytes=vmem_limit,
    )

    grid_spec = pltpu.PrefetchScalarGridSpec(
        num_scalar_prefetch=0,
        grid=grid,
        in_specs=[
            pl.BlockSpec((tb, D), lambda i: (i, 0)),        # x rows
            pl.BlockSpec((tb, D), lambda i: (i, 0)),        # eps rows
            pl.BlockSpec((D, 2 * D), lambda i: (0, 0)),     # fused weights (const)
            pl.BlockSpec((1, 2 * D), lambda i: (0, 0)),     # fused bias (const)
        ],
        out_specs=[pl.BlockSpec((tb, D), lambda i: (i, 0))] * 3,
    )
    out_shapes = tuple(jax.ShapeDtypeStruct((Bp, D), out_dtype) for _ in range(3))

    cost = pl.CostEstimate(
        flops=2 * Bp * D * (2 * D),
        transcendentals=0,
        bytes_accessed=int(Bp * D * (isz_x + isz_e + 3 * isz_o)
                           + 2 * D * D * isz_w
                           + 2 * D * jnp.dtype(b_cat.dtype).itemsize),
    )
    call_kwargs = dict(out_shape=out_shapes, grid_spec=grid_spec,
                       compiler_params=compiler_params)
    try:
        fn = pl.pallas_call(_reparam_kernel, cost_estimate=cost, **call_kwargs)
    except TypeError:  # older jax without cost_estimate kwarg
        fn = pl.pallas_call(_reparam_kernel, **call_kwargs)

    z, mu, sigma = fn(x, eps, w_cat, b_cat)
    if Bp != B:
        z, mu, sigma = z[:B], mu[:B], sigma[:B]
    return z, mu, sigma


def init_params(key, latent_dim, dtype=jnp.float32):
    """nn.Linear-style init (uniform(-1/sqrt(fan_in), 1/sqrt(fan_in)))."""
    k1, k2, k3, k4 = jax.random.split(key, 4)
    bound = 1.0 / float(jnp.sqrt(latent_dim))
    w_mean = jax.random.uniform(k1, (latent_dim, latent_dim), dtype, -bound, bound)
    b_mean = jax.random.uniform(k2, (latent_dim,), dtype, -bound, bound)
    w_logvar = jax.random.uniform(k3, (latent_dim, latent_dim), dtype, -bound, bound)
    b_logvar = jax.random.uniform(k4, (latent_dim,), dtype, -bound, bound)
    return w_mean, b_mean, w_logvar, b_logvar


if __name__ == "__main__":
    batch = 200          # deliberately ragged: exercises the pad-to-tile path
    latent_dim = 128     # lane-aligned latent dim (multiple of 128)
    dtype = jnp.float32

    key = jax.random.PRNGKey(0)
    k_params, k_x, k_eps = jax.random.split(key, 3)

    w_mean, b_mean, w_logvar, b_logvar = init_params(k_params, latent_dim, dtype)
    encoded_x = jax.random.normal(k_x, (batch, latent_dim), dtype)

    # Hoisted once (would live at parameter-init time in a real model).
    w_cat, b_cat = fuse_reparam_params(w_mean, b_mean, w_logvar, b_logvar)

    # Plain-JAX reference for the deterministic parts.
    mu_ref = encoded_x @ w_mean.T + b_mean
    sigma_ref = encoded_x @ w_logvar.T + b_logvar

    # 1) Default path: eps drawn in the wrapper from PRNGKey(seed) and streamed.
    z, mu, sigma = reparametrisation_forward(encoded_x, w_cat, b_cat, seed=42)
    jax.block_until_ready((z, mu, sigma))
    assert z.shape == mu.shape == sigma.shape == (batch, latent_dim)
    assert jnp.allclose(mu, mu_ref, atol=1e-4), "mu mismatch"
    assert jnp.allclose(sigma, sigma_ref, atol=1e-4), "sigma mismatch"
    assert bool(jnp.all(jnp.isfinite(z))), "non-finite z"

    # 2) Explicit-eps path: exact end-to-end check of the fused compute incl. z.
    eps = jax.random.normal(k_eps, (batch, latent_dim), jnp.float32)
    z2, mu2, sigma2 = reparametrisation_forward(encoded_x, w_cat, b_cat, eps=eps)
    jax.block_until_ready((z2, mu2, sigma2))
    assert jnp.allclose(mu2, mu_ref, atol=1e-4)
    assert jnp.allclose(sigma2, sigma_ref, atol=1e-4)
    assert jnp.allclose(z2, mu_ref + eps * sigma_ref, atol=1e-4)

    print("KERNEL_OK")
</pallas_src>

<mosaic_0001>
module attributes {stable_mosaic.version = 11 : i64} {
  func.func @_reparam_kernel(%arg0: i32, %arg1: memref<56x128xf32, #tpu.memory_space<vmem>>, %arg2: memref<56x128xf32, #tpu.memory_space<vmem>>, %arg3: memref<128x256xf32, #tpu.memory_space<vmem>>, %arg4: memref<1x256xf32, #tpu.memory_space<vmem>>, %arg5: memref<56x128xf32, #tpu.memory_space<vmem>>, %arg6: memref<56x128xf32, #tpu.memory_space<vmem>>, %arg7: memref<56x128xf32, #tpu.memory_space<vmem>>) attributes {dimension_semantics = [#tpu.dimension_semantics<parallel>], iteration_bounds = array<i64: 4>, scalar_prefetch = 0 : i64, scratch_operands = 0 : i64, tpu.core_type = #tpu.core_type<tc>, window_params = [{transform_indices = @transform_0, window_bounds = array<i64: 56, 128>}, {transform_indices = @transform_1, window_bounds = array<i64: 56, 128>}, {pipeline_mode = #tpu.pipeline_mode<synchronous>, transform_indices = @transform_2, window_bounds = array<i64: 128, 256>}, {pipeline_mode = #tpu.pipeline_mode<synchronous>, transform_indices = @transform_3, window_bounds = array<i64: 1, 256>}, {transform_indices = @transform_4, window_bounds = array<i64: 56, 128>}, {transform_indices = @transform_5, window_bounds = array<i64: 56, 128>}, {transform_indices = @transform_6, window_bounds = array<i64: 56, 128>}]} {
    %c0 = arith.constant 0 : index
    %c0_0 = arith.constant 0 : index
    %0 = vector.load %arg1[%c0, %c0_0] : memref<56x128xf32, #tpu.memory_space<vmem>>, vector<56x128xf32>
    %c0_1 = arith.constant 0 : index
    %c0_2 = arith.constant 0 : index
    %1 = vector.load %arg3[%c0_1, %c0_2] : memref<128x256xf32, #tpu.memory_space<vmem>>, vector<128x256xf32>
    %cst = arith.constant dense<0.000000e+00> : vector<56x256xf32>
    %2 = tpu.matmul %0, %1, %cst {dimension_numbers = #tpu.dot_dimension_numbers<[1], [0], [0], [1], [0, 0, 1, 1], [], []>} : vector<56x128xf32>, vector<128x256xf32>, vector<56x256xf32> -> vector<56x256xf32>
    %c0_3 = arith.constant 0 : index
    %c0_4 = arith.constant 0 : index
    %3 = vector.load %arg4[%c0_3, %c0_4] : memref<1x256xf32, #tpu.memory_space<vmem>>, vector<1x256xf32>
    %4 = vector.broadcast %3 : vector<1x256xf32> to vector<56x256xf32>
    %5 = arith.addf %2, %4 : vector<56x256xf32>
    %6 = vector.extract_strided_slice %5 {offsets = [0, 0], sizes = [56, 128], strides = [1, 1]} : vector<56x256xf32> to vector<56x128xf32>
    %7 = vector.extract_strided_slice %5 {offsets = [0, 128], sizes = [56, 128], strides = [1, 1]} : vector<56x256xf32> to vector<56x128xf32>
    %c0_5 = arith.constant 0 : index
    %c0_6 = arith.constant 0 : index
    %8 = vector.load %arg2[%c0_5, %c0_6] : memref<56x128xf32, #tpu.memory_space<vmem>>, vector<56x128xf32>
    %9 = arith.mulf %8, %7 : vector<56x128xf32>
    %10 = arith.addf %6, %9 : vector<56x128xf32>
    %c0_7 = arith.constant 0 : index
    %c0_8 = arith.constant 0 : index
    %11 = vector.load %arg5[%c0_7, %c0_8] : memref<56x128xf32, #tpu.memory_space<vmem>>, vector<56x128xf32>
    tpu.vector_store %arg5[%c0_7, %c0_8], %10 {strides = array<i32>} : memref<56x128xf32, #tpu.memory_space<vmem>>, vector<56x128xf32>,
    %c0_9 = arith.constant 0 : index
    %c0_10 = arith.constant 0 : index
    %12 = vector.load %arg6[%c0_9, %c0_10] : memref<56x128xf32, #tpu.memory_space<vmem>>, vector<56x128xf32>
    tpu.vector_store %arg6[%c0_9, %c0_10], %6 {strides = array<i32>} : memref<56x128xf32, #tpu.memory_space<vmem>>, vector<56x128xf32>,
    %c0_11 = arith.constant 0 : index
    %c0_12 = arith.constant 0 : index
    %13 = vector.load %arg7[%c0_11, %c0_12] : memref<56x128xf32, #tpu.memory_space<vmem>>, vector<56x128xf32>
    tpu.vector_store %arg7[%c0_11, %c0_12], %7 {strides = array<i32>} : memref<56x128xf32, #tpu.memory_space<vmem>>, vector<56x128xf32>,
    return
  }
  func.func @transform_0(%arg0: i32) -> (i32, i32) {
    %c0_i32 = arith.constant 0 : i32
    %c0_i32_0 = arith.constant 0 : i32
    return %arg0, %c0_i32 : i32, i32
  }
  func.func @transform_1(%arg0: i32) -> (i32, i32) {
    %c0_i32 = arith.constant 0 : i32
    %c0_i32_0 = arith.constant 0 : i32
    return %arg0, %c0_i32 : i32, i32
  }
  func.func @transform_2(%arg0: i32) -> (i32, i32) {
    %c0_i32 = arith.constant 0 : i32
    %c0_i32_0 = arith.constant 0 : i32
    %c0_i32_1 = arith.constant 0 : i32
    return %c0_i32, %c0_i32_0 : i32, i32
  }
  func.func @transform_3(%arg0: i32) -> (i32, i32) {
    %c0_i32 = arith.constant 0 : i32
    %c0_i32_0 = arith.constant 0 : i32
    %c0_i32_1 = arith.constant 0 : i32
    return %c0_i32, %c0_i32_0 : i32, i32
  }
  func.func @transform_4(%arg0: i32) -> (i32, i32) {
    %c0_i32 = arith.constant 0 : i32
    %c0_i32_0 = arith.constant 0 : i32
    return %arg0, %c0_i32 : i32, i32
  }
  func.func @transform_5(%arg0: i32) -> (i32, i32) {
    %c0_i32 = arith.constant 0 : i32
    %c0_i32_0 = arith.constant 0 : i32
    return %arg0, %c0_i32 : i32, i32
  }
  func.func @transform_6(%arg0: i32) -> (i32, i32) {
    %c0_i32 = arith.constant 0 : i32
    %c0_i32_0 = arith.constant 0 : i32
    return %arg0, %c0_i32 : i32, i32
  }
}

</mosaic_0001>

<bundles_post_ra>
// kernel: tpu_custom_call.1
= control target key start
LH: loop header
LB: loop body
LE: loop exit
PB: predicated region body
PF: predicated region fallthrough
CT: control target
= control target key end

     0   :  { %s1558_s0 = inlined_call_operand.hbm [shape: f32[224,128], index: 0, kind: input, shape index: {}]   ;;  %s1559_s1 = inlined_call_operand.hbm [shape: f32[224,128], index: 1, kind: input, shape index: {}]   ;;  %s1560_s2 = inlined_call_operand.hbm [shape: f32[128,256], index: 2, kind: input, shape index: {}]   ;;  %s1561_s3 = inlined_call_operand.vmem [shape: f32[1,256], index: 3, kind: input, shape index: {}]   ;;  %s1562_s4 = inlined_call_operand.hbm [shape: f32[224,128], index: 4, kind: output, shape index: {0}]   ;;  %s1563_s5 = inlined_call_operand.hbm [shape: f32[224,128], index: 5, kind: output, shape index: {1}]   ;;  %s1564_s6 = inlined_call_operand.hbm [shape: f32[224,128], index: 6, kind: output, shape index: {2}]  }
   0x1   :  { %1570 = sst [smem:[#allocation18_spill]] %s1558_s0 }
   0x2   :  { %1571 = sst [smem:[#allocation19_spill]] %s1560_s2 }
   0x3   :  { %12 = vsyncpa [#allocation3], 0 }
   0x4   :  { %14 = vsyncpa [#allocation3 + $0x1], 0 }
   0x5   :  { %15 = vsyncpa [#allocation6], 0 }
   0x6   :  { %17 = vsyncpa [#allocation6 + $0x1], 0 }
   0x7   :  { %18 = vsyncpa [#allocation4], 0 }
   0x8   :  { %20 = vsyncpa [#allocation4 + $0x1], 0 }
   0x9   :  { %21 = vsyncpa [#allocation10], 0 }
   0xa   :  { %23 = vsyncpa [#allocation10 + $0x1], 0  ;;  %s1161_s21 = smov 0   ;;  %s1163_s22 = smov 0  }
   0xb   :  { %s1165_s23 = smov 0   ;;  %s1167_s24 = smov 0  }
   0xc LB: > { %s1182_s25 = sadd.s32 4294967295, %s1111_s24   ;;  %s1565_s26 = sadd.s32 4294967294, %s1111_s24   ;;  %s1111_s24 = sphi %s1167_s24, %s1593_s24   ;;  %s1107_s23 = sphi %s1165_s23, %s1592_s23   ;;  %s1103_s22 = sphi %s1163_s22, %s1591_s22   ;;  %s1099_s21 = sphi %s1161_s21, %s1590_s21  }
   0xd   : > { %p49_p0 = scmp.ne.s32.totalorder %s1103_s22, %s1099_s21  ;;  %p1567_p1 = scmp.eq.s32.totalorder %s1182_s25, 0 }
   0xe   : > { %p147_p3 = scmp.eq.s32.totalorder %s1565_s26, 3  ;;  %p770_p5 = scmp.ge.s32.totalorder %s1111_s24, 1 }
   0xf   : > { %p1193_p4 = por %p1567_p1, %p49_p0  ;;  %p206_p7 = scmp.lt.s32.totalorder %s1111_s24, 5 }
  0x10   : > { %p1198_p6 = por %p147_p3, %p49_p0  ;;  %s1113_s30 = smov [#allocation7]  }
  0x11   : > { %s1572_s27 = scalar_select %p1193_p4, 1, 0 }
  0x12   : > { %s1573_s28 = scalar_select %p1198_p6, 1, 0 }
  0x13   : > { %p1203_p8 = pnand %p770_p5, %p206_p7  ;;  %s218_s7 = sshll.u32 %s1113_s30, 4  ;;  %s219_s7 = int_to_ptr.vmem [resolvable:$true] %s218_s7 }
  0x14   : > { %s1216_s9 = sadd.s32 1, %s1111_s24   ;;  %s36_s10 = sadd.s32 1, %s1107_s23 }
  0x15   : > { %p836_p9 = pneg %p1203_p8  ;;  %s33_s11 = ssub.s32 %s1111_s24, %s1216_s9 }
  0x16   : > { %s912_s12 = scalar_lea.vmem %s219_s7, 4096  ;;  %p920_p3 = scmp.lt.s32.totalorder %s219_s7, %s219_s7 }
  0x17   : > { %p1211_p10 = pnand %p836_p9, %p1567_p1  ;;  %p913_p12 = scmp.ne.s32.totalorder %s219_s7, %s912_s12 }
  0x18   : > { %p921_p5 = scmp.lt.s32.totalorder %s912_s12, %s912_s12 }
  0x19   : > { %p903_p11 = pneg %p1211_p10 }
  0x1a   : > { %p922_p7 = por %p921_p5, %p920_p3 }
  0x1b   : > { %p915_p13 = pnand %p913_p12, %p903_p11 }
  0x1d   : > { %p916_p0 = pneg %p915_p13 }
  0x1f   : > { %p923_p2 = pnand %p922_p7, %p916_p0 }
  0x21   : > { %926 = shalt.err (!%p923_p2)
}
  0x22   : > { %s1114_s13 = smov 256   ;;  %s1115_s14 = smov 16  }
  0x23   : > { %s1576_s2 = sld [smem:[#allocation19_spill]]  ;;  %p34_p9 = scmp.eq.s32.totalorder %s33_s11, 0 }
  0x24   : > { %p43_p11 = scmp.ne.s32.totalorder %s1107_s23, %s1103_s22  ;;  %p44_p2 = scmp.eq.s32.totalorder %s1111_s24, 0 }
  0x25   : > { %p858_p12 = scmp.lt.s32.totalorder %s1111_s24, 4  ;;  %p1578_p0 = scmp.eq.s32.totalorder %s1182_s25, 3 }
  0x26   : > { %s1233_s17 = scalar_select %p34_p9, %s1107_s23, %s36_s10  }
  0x27   : > { %p45_p13 = por %p44_p2, %p43_p11  ;;  %p1237_p3 = por %p1578_p0, %p43_p11 }
  0x28   : > { %1577 = sst [smem:[#allocation17_spill]] %s1233_s17  ;;  %s235_s19 = sand.u32 1, %s1107_s23  }
  0x29   : > { %839 = dma.hbm_to_vmem [thread:$0]  (!%p1211_p10), %s1576_s2, 4096, %s219_s7, [#allocation6], %s1114_s13, %s1114_s13, %s1115_s14  }
  0x2a   : > { %s1579_s18 = scalar_select %p1237_p3, 1, 0 }
  0x2b   : > { %s1566_s20 = smul.u32 896, %s1111_s24  ;;  %s1580_s0 = sld [smem:[#allocation18_spill]] }
  0x2c   : > { %s1243_s30 = smul.u32 56, %s235_s19  ;;  %p1252_p10 = pnand %p858_p12, %p45_p13 }
  0x2d   : > { %s1259_s14 = scalar_lea.sflag [#allocation3], %s235_s19 }
  0x2e   : > { %s239_s11 = scalar_lea.vmem [#allocation2], %s1243_s30  ;;  %p929_p7 = pneg %p1252_p10 }
  0x2f   : > { %s246_s13 = sshll.u32 %s239_s11, 4  ;;  %s1257_s13 = int_to_ptr.vmem [resolvable:$true] %s246_s13 }
  0x31   : > { %s1250_s7 = scalar_lea.hbm %s1580_s0, %s1566_s20  ;;  %s932_s12 = scalar_lea.hbm %s1580_s0, 3584 }
  0x32   : > { %s927_s15 = scalar_lea.hbm %s1250_s7, 896  ;;  %p933_p2 = scmp.lt.s32.totalorder %s1250_s7, %s1580_s0 }
  0x33   : > { %p928_p5 = scmp.ne.s32.totalorder %s1250_s7, %s927_s15  ;;  %p934_p12 = scmp.lt.s32.totalorder %s932_s12, %s927_s15 }
  0x35   : > { %p930_p9 = pnand %p929_p7, %p928_p5  ;;  %p935_p13 = por %p934_p12, %p933_p2 }
  0x37   : > { %p931_p11 = pneg %p930_p9 }
  0x39   : > { %p936_p0 = pnand %p935_p13, %p931_p11 }
  0x3b   : > { %939 = shalt.err (!%p936_p0)
}
  0x3c   : > { %s940_s19 = scalar_lea.vmem %s1257_s13, 896  ;;  %s1116_s11 = smov [#allocation2]  }
  0x3d   : > { %p941_p1 = scmp.ne.s32.totalorder %s1257_s13, %s940_s19  ;;  %s945_s16 = sshll.u32 %s1116_s11, 4  ;;  %s946_s16 = int_to_ptr.vmem [resolvable:$false] %s945_s16 }
  0x3e   : > { %s947_s8 = scalar_lea.vmem %s946_s16, 1792  ;;  %p948_p6 = scmp.lt.s32.totalorder %s1257_s13, %s946_s16 }
  0x3f   : > { %p943_p5 = pnand %p941_p1, %p929_p7  ;;  %p949_p3 = scmp.lt.s32.totalorder %s947_s8, %s940_s19 }
  0x41   : > { %p944_p9 = pneg %p943_p5  ;;  %p950_p4 = por %p949_p3, %p948_p6 }
  0x43   : > { %p951_p2 = pnand %p950_p4, %p944_p9 }
  0x45   : > { %954 = shalt.err (!%p951_p2)
}
  0x46   : > { %s1117_s26 = smov 128   ;;  %s1118_s20 = smov 8  }
  0x47   : > { %843 = dma.hbm_to_vmem [thread:$0]  (!%p1252_p10), %s1250_s7, 896, %s1257_s13, %s1259_s14, %s1117_s26, %s1117_s26, %s1118_s20  }
  0x48   : > { %s256_s15 = sand.u32 1, %s1111_s24   ;;  %s1582_s12 = smul.u32 896, %s1111_s24 }
  0x49   : > { %s260_s8 = scalar_lea.vmem [#allocation5], %s1243_s30  ;;  %s257_s2 = scalar_lea.sflag [#allocation6], %s256_s15 }
  0x4a   : > { %s1295_s16 = scalar_lea.hbm %s1559_s1, %s1582_s12  ;;  %s267_s0 = sshll.u32 %s260_s8, 4  ;;  %s1298_s0 = int_to_ptr.vmem [resolvable:$true] %s267_s0 }
  0x4b   : > { %s955_s17 = scalar_lea.hbm %s1295_s16, 896  ;;  %s960_s14 = scalar_lea.hbm %s1559_s1, 3584 }
  0x4c   : > { %p956_p1 = scmp.ne.s32.totalorder %s1295_s16, %s955_s17  ;;  %p961_p3 = scmp.lt.s32.totalorder %s1295_s16, %s1559_s1 }
  0x4d   : > { %p962_p11 = scmp.lt.s32.totalorder %s960_s14, %s955_s17 }
  0x4e   : > { %p958_p4 = pnand %p956_p1, %p929_p7 }
  0x4f   : > { %p963_p12 = por %p962_p11, %p961_p3 }
  0x50   : > { %p959_p6 = pneg %p958_p4 }
  0x52   : > { %p964_p13 = pnand %p963_p12, %p959_p6 }
  0x54   : > { %967 = shalt.err (!%p964_p13)
}
  0x55   : > { %s968_s30 = scalar_lea.vmem %s1298_s0, 896  ;;  %s1119_s15 = smov [#allocation5]  }
  0x56   : > { %p969_p0 = scmp.ne.s32.totalorder %s1298_s0, %s968_s30  ;;  %s973_s11 = sshll.u32 %s1119_s15, 4  ;;  %s974_s11 = int_to_ptr.vmem [resolvable:$false] %s973_s11 }
  0x57   : > { %s975_s8 = scalar_lea.vmem %s974_s11, 1792  ;;  %p976_p2 = scmp.lt.s32.totalorder %s1298_s0, %s974_s11 }
  0x58   : > { %p971_p5 = pnand %p969_p0, %p929_p7  ;;  %p977_p1 = scmp.lt.s32.totalorder %s975_s8, %s968_s30 }
  0x5a   : > { %p972_p9 = pneg %p971_p5  ;;  %p978_p4 = por %p977_p1, %p976_p2 }
  0x5c   : > { %p979_p3 = pnand %p978_p4, %p972_p9 }
  0x5e   : > { %982 = shalt.err (!%p979_p3)
}
  0x5f   : > { %846 = dma.hbm_to_vmem [thread:$0]  (!%p1252_p10), %s1295_s16, 896, %s1298_s0, %s257_s2, %s1117_s26, %s1117_s26, %s1118_s20  }
  0x60   : > { %279 = sbr.rel (%p1203_p8) target bundleno = 406 (0x196), region = 36  ;;  %s1328_s17 = sand.u32 (!%p1203_p8), 1, %s1103_s22  }
  0x61   : > { %s1331_s7 = smul.u32 (!%p1203_p8), 56, %s1328_s17  ;;  %s282_s13 = scalar_lea.sflag (!%p1203_p8), [#allocation3], %s1328_s17 }
  0x62   : > { %p1583_p7 = scmp.ne.s32.totalorder (!%p1203_p8), %s1572_s27, 0 }
  0x63   : > { %s1335_s10 = scalar_lea.vmem (!%p1203_p8), [#allocation2], %s1331_s7 }
  0x65   : > { %1078 = dma.done.wait (%p1583_p7), %s282_s13, 896  }
  0x66   : > { %1080 = vsyncadd (%p1583_p7), %s282_s13, 4294966400  ;;  %s290_s0 = sand.u32 1, %s1182_s25   ;;  %s1345_s29 = scalar_lea.vmem [#allocation5], %s1331_s7 }
  0x67   : > { %s291_s2 = scalar_lea.sflag [#allocation6], %s290_s0 }
  0x68   : > { %1082 = dma.done.wait (%p1583_p7), %s291_s2, 896  }
  0x69   : > { %1084 = vsyncadd (%p1583_p7), %s291_s2, 4294966400  ;;  %p1584_p8 = scmp.eq.s32.totalorder %s1182_s25, 0 }
  0x6b   : > { %1086 = dma.done.wait (%p1584_p8), [#allocation6], 4096   ;;  %p1585_p10 = pmov %p1584_p8 }
  0x6c   : > { %v1120_v0 = vmov 0.0   ;;  %v385_v1 = vld [vmem:[#allocation7 + $0xf8] sm:$0xff]  ;;  %v384_v2 = vld [vmem:[#allocation7 + $0xf0] sm:$0xff]  ;;  %v383_v3 = vld [vmem:[#allocation7 + $0xe8] sm:$0xff]  ;;  %v388_v40 = vlaneseq  ;;  %s1381_s20 = scalar_lea.vmem [#allocation9], %s1331_s7  ;;  %s1388_s16 = scalar_lea.vmem [#allocation11], %s1331_s7 }
  0x6d   : > { %1088 = vsyncadd (%p1585_p10), [#allocation6], 4294963200  ;;  %462 = vmatprep.mubr.f32.mxu0 %v1120_v0  ;;  %486 = vmatprep.mubr.f32.mxu1 %v1120_v0  ;;  %v382_v4 = vld [vmem:[#allocation7 + $0xe0] sm:$0xff]  ;;  %v381_v5 = vld [vmem:[#allocation7 + $0xd8] sm:$0xff]  ;;  %s587_s14 = sshll.u32 %s1381_s20, 4  ;;  %s1402_s12 = scalar_lea.vmem [#allocation8], %s1331_s7  ;;  %s1415_s14 = int_to_ptr.vmem [resolvable:$true] %s587_s14 }
  0x6e   : > { %398 = vmatprep.subr.mxu0 %v385_v1  ;;  %787 = vmatprep.subr.mxu1 %v385_v1  ;;  %v380_v6 = vld [vmem:[#allocation7 + $0xd0] sm:$0xff]  ;;  %v379_v7 = vld [vmem:[#allocation7 + $0xc8] sm:$0xff]  ;;  %v378_v8 = vld [vmem:[#allocation7 + $0xc0] sm:$0xff]  ;;  %v389_v41 = vshrl.u32 %v388_v40, 7  ;;  %s1411_s19 = smul.u32 896, %s1182_s25  ;;  %s603_s30 = sshll.u32 %s1388_s16, 4  ;;  %s1437_s30 = int_to_ptr.vmem [resolvable:$true] %s603_s30 }
  0x6f   : > { %399 = vmatpush1.msra.mxu0 %v384_v2  ;;  %803 = vmatpush1.msra.mxu1 %v384_v2  ;;  %v377_v9 = vld [vmem:[#allocation7 + $0xb8] sm:$0xff]  ;;  %v376_v10 = vld [vmem:[#allocation7 + $0xb0] sm:$0xff]  ;;  %v375_v11 = vld [vmem:[#allocation7 + $0xa8] sm:$0xff]  ;;  %s571_s7 = sshll.u32 %s1402_s12, 4  ;;  %s1450_s27 = scalar_lea.sflag [#allocation10], %s290_s0  ;;  %s1478_s7 = int_to_ptr.vmem [resolvable:$true] %s571_s7 }
  0x70   : > { %400 = vmatprep.subr.mxu0 %v383_v3  ;;  %788 = vmatprep.subr.mxu1 %v383_v3  ;;  %v374_v12 = vld [vmem:[#allocation7 + $0xa0] sm:$0xff]  ;;  %v373_v13 = vld [vmem:[#allocation7 + $0x98] sm:$0xff]  ;;  %v372_v14 = vld [vmem:[#allocation7 + $0x90] sm:$0xff]  ;;  %v390_v42 = vsub.s32 0, %v389_v41  ;;  %v394_v44 = vsub.s32 1, %v389_v41  ;;  %s1433_s8 = scalar_lea.hbm %s1563_s5, %s1411_s19  ;;  %s1446_s2 = scalar_lea.hbm %s1564_s6, %s1411_s19 }
  0x71   : > { %401 = vmatpush1.msra.mxu0 %v382_v4  ;;  %804 = vmatpush1.msra.mxu1 %v382_v4  ;;  %v371_v15 = vld [vmem:[#allocation7 + $0x88] sm:$0xff]  ;;  %v370_v16 = vld [vmem:[#allocation7 + $0x80] sm:$0xff]  ;;  %v369_v17 = vld [vmem:[#allocation7 + $0x78] sm:$0xff]  ;;  %s983_s26 = scalar_lea.vmem %s1415_s14, 896  ;;  %p1586_p11 = scmp.ne.s32.totalorder %s1579_s18, 0 }
  0x72   : > { %402 = vmatprep.subr.mxu0 %v381_v5  ;;  %789 = vmatprep.subr.mxu1 %v381_v5  ;;  %v368_v18 = vld [vmem:[#allocation7 + $0x70] sm:$0xff]  ;;  %v367_v19 = vld [vmem:[#allocation7 + $0x68] sm:$0xff]  ;;  %v366_v20 = vld [vmem:[#allocation7 + $0x60] sm:$0xff]  ;;  %p984_p6 = scmp.ne.s32.totalorder %s1415_s14, %s983_s26 }
  0x73   : > { %403 = vmatpush1.msra.mxu0 %v380_v6  ;;  %805 = vmatpush1.msra.mxu1 %v380_v6  ;;  %v365_v21 = vld [vmem:[#allocation7 + $0x58] sm:$0xff]  ;;  %v364_v22 = vld [vmem:[#allocation7 + $0x50] sm:$0xff]  ;;  %v363_v23 = vld [vmem:[#allocation7 + $0x48] sm:$0xff] }
  0x74   : > { %404 = vmatprep.subr.mxu0 %v379_v7  ;;  %790 = vmatprep.subr.mxu1 %v379_v7  ;;  %v362_v24 = vld [vmem:[#allocation7 + $0x40] sm:$0xff]  ;;  %v361_v25 = vld [vmem:[#allocation7 + $0x38] sm:$0xff]  ;;  %v360_v26 = vld [vmem:[#allocation7 + $0x30] sm:$0xff]  ;;  %p985_p12 = pnand %p984_p6, %p1586_p11 }
  0x75   : > { %405 = vmatpush1.msra.mxu0 %v378_v8  ;;  %806 = vmatpush1.msra.mxu1 %v378_v8  ;;  %v359_v27 = vld [vmem:[#allocation7 + $0x28] sm:$0xff]  ;;  %v358_v28 = vld [vmem:[#allocation7 + $0x20] sm:$0xff]  ;;  %v357_v29 = vld [vmem:[#allocation7 + $0x18] sm:$0xff] }
  0x76   : > { %406 = vmatprep.subr.mxu0 %v377_v9  ;;  %791 = vmatprep.subr.mxu1 %v377_v9  ;;  %v356_v30 = vld [vmem:[#allocation7 + $0x10] sm:$0xff]  ;;  %v355_v31 = vld [vmem:[#allocation7 + $0x8] sm:$0xff]  ;;  %v354_v32 = vld [vmem:[#allocation7] sm:$0xff]  ;;  %p986_p13 = pneg %p985_p12 }
  0x77   : > { %407 = vmatpush1.msra.mxu0 %v376_v10  ;;  %807 = vmatpush1.msra.mxu1 %v376_v10  ;;  %v347_v33 = vld [vmem:[%s1335_s10] sm:$0xff]  ;;  %v348_v35 = vld [vmem:[%s1335_s10 + $0x8] sm:$0xff]  ;;  %v349_v37 = vld [vmem:[%s1335_s10 + $0x10] sm:$0xff] }
  0x78   : > { %408 = vmatprep.subr.mxu0 %v375_v11  ;;  %792 = vmatprep.subr.mxu1 %v375_v11  ;;  %v351_v34 = vld [vmem:[%s1335_s10 + $0x20] sm:$0xff]  ;;  %v352_v36 = vld [vmem:[%s1335_s10 + $0x28] sm:$0xff]  ;;  %v353_v38 = vld [vmem:[%s1335_s10 + $0x30] sm:$0xff] }
  0x79   : > { %409 = vmatpush1.msra.mxu0 %v374_v12  ;;  %808 = vmatpush1.msra.mxu1 %v374_v12  ;;  %v350_v39 = vld [vmem:[%s1335_s10 + $0x18] sm:$0xff]  ;;  %v386_v43 = vld [vmem:[%s1561_s3] sm:$0x3]  ;;  %v505_v52 = vld [vmem:[%s1345_s29] sm:$0xff] }
  0x7a   : > { %410 = vmatprep.subr.mxu0 %v373_v13  ;;  %793 = vmatprep.subr.mxu1 %v373_v13  ;;  %v1372_v45 = vrot.slane %v386_v43, %v390_v42  ;;  %v1374_v46 = vrot.slane %v386_v43, %v394_v44  ;;  %v509_v54 = vld [vmem:[%s1345_s29 + $0x20] sm:$0xff]  ;;  %v510_v2 = vld [vmem:[%s1345_s29 + $0x28] sm:$0xff] }
  0x7b   : > { %411 = vmatpush1.msra.mxu0 %v372_v14  ;;  %809 = vmatpush1.msra.mxu1 %v372_v14  ;;  %v507_v14 = vld [vmem:[%s1345_s29 + $0x10] sm:$0xff] }
  0x7c   : > { %412 = vmatprep.subr.mxu0 %v371_v15  ;;  %794 = vmatprep.subr.mxu1 %v371_v15 }
  0x7d   : > { %413 = vmatpush1.msra.mxu0 %v370_v16  ;;  %810 = vmatpush1.msra.mxu1 %v370_v16  ;;  %v511_v16 = vld [vmem:[%s1345_s29 + $0x30] sm:$0xff] }
  0x7e   : > { %414 = vmatprep.subr.mxu0 %v369_v17  ;;  %795 = vmatprep.subr.mxu1 %v369_v17 }
  0x7f   : > { %415 = vmatpush1.msra.mxu0 %v368_v18  ;;  %811 = vmatpush1.msra.mxu1 %v368_v18 }
  0x80   : > { %416 = vmatprep.subr.mxu0 %v367_v19  ;;  %796 = vmatprep.subr.mxu1 %v367_v19 }
  0x81   : > { %417 = vmatpush1.msra.mxu0 %v366_v20  ;;  %812 = vmatpush1.msra.mxu1 %v366_v20 }
  0x82   : > { %418 = vmatprep.subr.mxu0 %v365_v21  ;;  %797 = vmatprep.subr.mxu1 %v365_v21 }
  0x83   : > { %419 = vmatpush1.msra.mxu0 %v364_v22  ;;  %813 = vmatpush1.msra.mxu1 %v364_v22 }
  0x84   : > { %420 = vmatprep.subr.mxu0 %v363_v23  ;;  %798 = vmatprep.subr.mxu1 %v363_v23 }
  0x85   : > { %421 = vmatpush1.msra.mxu0 %v362_v24  ;;  %814 = vmatpush1.msra.mxu1 %v362_v24 }
  0x86   : > { %422 = vmatprep.subr.mxu0 %v361_v25  ;;  %799 = vmatprep.subr.mxu1 %v361_v25 }
  0x87   : > { %423 = vmatpush1.msra.mxu0 %v360_v26  ;;  %815 = vmatpush1.msra.mxu1 %v360_v26  ;;  %v508_v26 = vld [vmem:[%s1345_s29 + $0x18] sm:$0xff] }
  0x88   : > { %424 = vmatprep.subr.mxu0 %v359_v27  ;;  %800 = vmatprep.subr.mxu1 %v359_v27 }
  0x89   : > { %425 = vmatpush1.msra.mxu0 %v358_v28  ;;  %816 = vmatpush1.msra.mxu1 %v358_v28 }
  0x8a   : > { %426 = vmatprep.subr.mxu0 %v357_v29  ;;  %801 = vmatprep.subr.mxu1 %v357_v29 }
  0x8b   : > { %427 = vmatpush1.msra.mxu0 %v356_v30  ;;  %817 = vmatpush1.msra.mxu1 %v356_v30 }
  0x8c   : > { %428 = vmatprep.subr.mxu0 %v355_v31  ;;  %802 = vmatprep.subr.mxu1 %v355_v31 }
  0x8d   : > { %429 = vmatpush1.msra.mxu0 %v354_v32  ;;  %818 = vmatpush1.msra.mxu1 %v354_v32 }
  0x8e   : > { %463 = vmatmul.mubr.f32.vlgmr.msra.gmra.mxu0 %v347_v33  ;;  %487 = vmatmul.mubr.f32.vlgmr.msra.gmra.mxu1 %v351_v34 }
  0x8f   : > { %468 = vmatprep.mubr.f32.mxu0 %v1120_v0  ;;  %492 = vmatprep.mubr.f32.mxu1 %v1120_v0 }
  0x92   : > { %469 = vmatmul.mubr.f32.gmra.mxu0 %v348_v35  ;;  %493 = vmatmul.mubr.f32.gmra.mxu1 %v352_v36 }
  0x93   : > { %474 = vmatprep.mubr.f32.mxu0 %v1120_v0  ;;  %498 = vmatprep.mubr.f32.mxu1 %v1120_v0 }
  0x96   : > { %475 = vmatmul.mubr.f32.gmra.mxu0 %v349_v37  ;;  %499 = vmatmul.mubr.f32.gmra.mxu1 %v353_v38 }
  0x97   : > { %480 = vmatprep.mubr.f32.mxu0 %v1120_v0  ;;  %v506_v0 = vld [vmem:[%s1345_s29 + $0x8] sm:$0xff]  ;;  %s1121_s29 = smov [#allocation9]  }
  0x98   : > { %s987_s15 = sshll.u32 %s1121_s29, 4  ;;  %s988_s15 = int_to_ptr.vmem [resolvable:$false] %s987_s15 }
  0x99   : > { %s989_s11 = scalar_lea.vmem %s988_s15, 1792  ;;  %p990_p0 = scmp.lt.s32.totalorder %s1415_s14, %s988_s15 }
  0x9a   : > { %481 = vmatmul.mubr.f32.gmra.mxu0 %v350_v39  ;;  %p991_p5 = scmp.lt.s32.totalorder %s989_s11, %s983_s26 }
  0x9c   : > { %p992_p9 = por %p991_p5, %p990_p0 }
  0x9e   : > { %p993_p2 = pnand %p992_p9, %p986_p13 }
 0x14e   : > { %v464_v47 = vpop.f32.mrf.mxu0  ;;  %v488_v48 = vpop.f32.mrf.mxu1 }
 0x14f   : > { %v465_v49 = vadd.f32 %v464_v47, %v1372_v45  ;;  %v489_v50 = vadd.f32 %v488_v48, %v1372_v45 }
 0x150   : > { %v466_v51 = vpop.f32.mrf.mxu0  ;;  %v490_v53 = vpop.f32.mrf.mxu1 }
 0x151   : > { %533 = vst [vmem:[%s1381_s20] sm:$0xff] %v465_v49  ;;  %537 = vst [vmem:[%s1381_s20 + $0x20] sm:$0xff] %v489_v50  ;;  %v467_v55 = vadd.f32 %v466_v51, %v1374_v46  ;;  %v491_v56 = vadd.f32 %v490_v53, %v1374_v46 }
 0x152   : > { %v470_v57 = vpop.f32.mrf.mxu0  ;;  %v494_v58 = vpop.f32.mrf.mxu1 }
 0x153   : > { %v512_v59 = vmul.f32 %v505_v52, %v467_v55  ;;  %540 = vst [vmem:[%s1388_s16] sm:$0xff] %v467_v55  ;;  %v516_v60 = vmul.f32 %v509_v54, %v491_v56  ;;  %544 = vst [vmem:[%s1388_s16 + $0x20] sm:$0xff] %v491_v56  ;;  %v471_v61 = vadd.f32 %v470_v57, %v1372_v45 }
 0x154   : > { %v495_v62 = vadd.f32 %v494_v58, %v1372_v45  ;;  %v472_v63 = vpop.f32.mrf.mxu0  ;;  %v496_v1 = vpop.f32.mrf.mxu1 }
 0x155   : > { %v519_v3 = vadd.f32 %v512_v59, %v465_v49  ;;  %v523_v4 = vadd.f32 %v516_v60, %v489_v50  ;;  %534 = vst [vmem:[%s1381_s20 + $0x8] sm:$0xff] %v471_v61  ;;  %v473_v5 = vadd.f32 %v472_v63, %v1374_v46  ;;  %v497_v6 = vadd.f32 %v496_v1, %v1374_v46 }
 0x156   : > { %538 = vst [vmem:[%s1381_s20 + $0x28] sm:$0xff] %v495_v62  ;;  %v476_v7 = vpop.f32.mrf.mxu0  ;;  %v500_v8 = vpop.f32.mrf.mxu1 }
 0x157   : > { %526 = vst [vmem:[%s1402_s12] sm:$0xff] %v519_v3  ;;  %530 = vst [vmem:[%s1402_s12 + $0x20] sm:$0xff] %v523_v4  ;;  %v513_v9 = vmul.f32 %v506_v0, %v473_v5  ;;  %v517_v10 = vmul.f32 %v510_v2, %v497_v6  ;;  %v477_v11 = vadd.f32 %v476_v7, %v1372_v45 }
 0x158   : > { %541 = vst [vmem:[%s1388_s16 + $0x8] sm:$0xff] %v473_v5  ;;  %545 = vst [vmem:[%s1388_s16 + $0x28] sm:$0xff] %v497_v6  ;;  %v501_v12 = vadd.f32 %v500_v8, %v1372_v45  ;;  %v478_v13 = vpop.f32.mrf.mxu0  ;;  %v502_v15 = vpop.f32.mrf.mxu1 }
 0x159   : > { %v520_v17 = vadd.f32 %v513_v9, %v471_v61  ;;  %v524_v18 = vadd.f32 %v517_v10, %v495_v62  ;;  %535 = vst [vmem:[%s1381_s20 + $0x10] sm:$0xff] %v477_v11  ;;  %v479_v19 = vadd.f32 %v478_v13, %v1374_v46  ;;  %v503_v20 = vadd.f32 %v502_v15, %v1374_v46 }
 0x15a   : > { %539 = vst [vmem:[%s1381_s20 + $0x30] sm:$0xff] %v501_v12  ;;  %v482_v21 = vpop.f32.mrf.mxu0 }
 0x15b   : > { %527 = vst [vmem:[%s1402_s12 + $0x8] sm:$0xff] %v520_v17  ;;  %531 = vst [vmem:[%s1402_s12 + $0x28] sm:$0xff] %v524_v18  ;;  %v514_v22 = vmul.f32 %v507_v14, %v479_v19  ;;  %v518_v23 = vmul.f32 %v511_v16, %v503_v20  ;;  %v1427_v24 = vadd.f32 %v482_v21, %v1372_v45 }
 0x15c   : > { %542 = vst [vmem:[%s1388_s16 + $0x10] sm:$0xff] %v479_v19  ;;  %546 = vst [vmem:[%s1388_s16 + $0x30] sm:$0xff] %v503_v20  ;;  %v484_v25 = vpop.f32.mrf.mxu0 }
 0x15d   : > { %v521_v27 = vadd.f32 %v514_v22, %v477_v11  ;;  %v525_v28 = vadd.f32 %v518_v23, %v501_v12  ;;  %536 = vst [vmem:[%s1381_s20 + $0x18] sm:$0xff] %v1427_v24  ;;  %v485_v29 = vadd.f32 %v484_v25, %v1374_v46 }
 0x15e   : > { %996 = shalt.err (!%p993_p2)
}
 0x15f   : > { %s997_s25 = scalar_lea.hbm %s1433_s8, 896  ;;  %s1001_s13 = scalar_lea.hbm %s1563_s5, 3584 }
 0x160   : > { %p998_p1 = scmp.ne.s32.totalorder %s1433_s8, %s997_s25  ;;  %p1002_p7 = scmp.lt.s32.totalorder %s1433_s8, %s1563_s5 }
 0x161   : > { %p1003_p8 = scmp.lt.s32.totalorder %s1001_s13, %s997_s25 }
 0x162   : > { %p999_p4 = pnand %p998_p1, %p1586_p11 }
 0x163   : > { %p1004_p10 = por %p1003_p8, %p1002_p7 }
 0x164   : > { %p1000_p3 = pneg %p999_p4 }
 0x166   : > { %p1005_p6 = pnand %p1004_p10, %p1000_p3 }
 0x168   : > { %1008 = shalt.err (!%p1005_p6)
}
 0x169   : > { %s1122_s26 = smov 128   ;;  %s1123_s15 = smov 8   ;;  %528 = vst [vmem:[%s1402_s12 + $0x10] sm:$0xff] %v521_v27  ;;  %532 = vst [vmem:[%s1402_s12 + $0x30] sm:$0xff] %v525_v28  ;;  %v515_v30 = vmul.f32 %v508_v26, %v485_v29 }
 0x16a   : > { %831 = dma.vmem_to_hbm [thread:$0]  (%p1586_p11), %s1415_s14, 896, %s1433_s8, %s1450_s27, %s1122_s26, %s1122_s26, %s1123_s15  }
 0x16b   : > { %543 = vst [vmem:[%s1388_s16 + $0x18] sm:$0xff] %v485_v29  ;;  %s1009_s11 = scalar_lea.vmem %s1437_s30, 896  ;;  %s1124_s25 = smov [#allocation11]  }
 0x16c   : > { %p1010_p12 = scmp.ne.s32.totalorder %s1437_s30, %s1009_s11  ;;  %s1013_s0 = sshll.u32 %s1124_s25, 4  ;;  %s1014_s0 = int_to_ptr.vmem [resolvable:$false] %s1013_s0 }
 0x16d   : > { %s1015_s20 = scalar_lea.vmem %s1014_s0, 1792  ;;  %p1016_p5 = scmp.lt.s32.totalorder %s1437_s30, %s1014_s0 }
 0x16e   : > { %p1011_p13 = pnand %p1010_p12, %p1586_p11  ;;  %p1017_p9 = scmp.lt.s32.totalorder %s1015_s20, %s1009_s11 }
 0x170   : > { %p1012_p0 = pneg %p1011_p13  ;;  %p1018_p2 = por %p1017_p9, %p1016_p5 }
 0x172   : > { %p1019_p1 = pnand %p1018_p2, %p1012_p0 }
 0x174   : > { %1022 = shalt.err (!%p1019_p1)
}
 0x175   : > { %s1023_s14 = scalar_lea.hbm %s1446_s2, 896  ;;  %s1027_s13 = scalar_lea.hbm %s1564_s6, 3584 }
 0x176   : > { %p1024_p4 = scmp.ne.s32.totalorder %s1446_s2, %s1023_s14  ;;  %p1028_p8 = scmp.lt.s32.totalorder %s1446_s2, %s1564_s6 }
 0x177   : > { %p1029_p10 = scmp.lt.s32.totalorder %s1027_s13, %s1023_s14 }
 0x178   : > { %p1025_p3 = pnand %p1024_p4, %p1586_p11 }
 0x179   : > { %p1030_p6 = por %p1029_p10, %p1028_p8 }
 0x17a   : > { %p1026_p7 = pneg %p1025_p3 }
 0x17c   : > { %p1031_p12 = pnand %p1030_p6, %p1026_p7 }
 0x17e   : > { %1034 = shalt.err (!%p1031_p12)
}
 0x17f   : > { %832 = dma.vmem_to_hbm [thread:$0]  (%p1586_p11), %s1437_s30, 896, %s1446_s2, %s1450_s27, %s1122_s26, %s1122_s26, %s1123_s15   ;;  %v522_v31 = vadd.f32 %v515_v30, %v1427_v24 }
 0x180   : > { %s1512_s0 = scalar_lea.hbm %s1562_s4, %s1411_s19  ;;  %s548_s20 = scalar_lea.sflag [#allocation4], %s1328_s17 }
 0x181   : > { %529 = vst [vmem:[%s1402_s12 + $0x18] sm:$0xff] %v522_v31  ;;  %s1035_s14 = scalar_lea.vmem %s1478_s7, 896  ;;  %s1125_s16 = smov [#allocation8]  }
 0x182   : > { %p1036_p13 = scmp.ne.s32.totalorder %s1478_s7, %s1035_s14  ;;  %s1039_s8 = sshll.u32 %s1125_s16, 4  ;;  %s1040_s8 = int_to_ptr.vmem [resolvable:$false] %s1039_s8 }
 0x183   : > { %s1041_s13 = scalar_lea.vmem %s1040_s8, 1792  ;;  %p1042_p9 = scmp.lt.s32.totalorder %s1478_s7, %s1040_s8 }
 0x184   : > { %p1037_p0 = pnand %p1036_p13, %p1586_p11  ;;  %p1043_p2 = scmp.lt.s32.totalorder %s1041_s13, %s1035_s14 }
 0x186   : > { %p1038_p5 = pneg %p1037_p0  ;;  %p1044_p1 = por %p1043_p2, %p1042_p9 }
 0x188   : > { %p1045_p4 = pnand %p1044_p1, %p1038_p5 }
 0x18a   : > { %1048 = shalt.err (!%p1045_p4)
}
 0x18b   : > { %s1049_s12 = scalar_lea.hbm %s1512_s0, 896  ;;  %s1053_s30 = scalar_lea.hbm %s1562_s4, 3584 }
 0x18c   : > { %p1050_p3 = scmp.ne.s32.totalorder %s1512_s0, %s1049_s12  ;;  %p1054_p10 = scmp.lt.s32.totalorder %s1512_s0, %s1562_s4 }
 0x18d   : > { %p1055_p6 = scmp.lt.s32.totalorder %s1053_s30, %s1049_s12 }
 0x18e   : > { %p1051_p7 = pnand %p1050_p3, %p1586_p11 }
 0x18f   : > { %p1056_p12 = por %p1055_p6, %p1054_p10 }
 0x190   : > { %p1052_p8 = pneg %p1051_p7 }
 0x192   : > { %p1057_p13 = pnand %p1056_p12, %p1052_p8 }
 0x194   : > { %1060 = shalt.err (!%p1057_p13)
}
 0x195   : > { %830 = dma.vmem_to_hbm [thread:$0]  (%p1586_p11), %s1478_s7, 896, %s1512_s0, %s548_s20, %s1122_s26, %s1122_s26, %s1123_s15  }
 0x196 PF: > { %p860_p0 = scmp.ge.s32.totalorder %s1111_s24, 2  ;;  %s618_s10 = sand.u32 1, %s1099_s21  }
 0x197   : > { %p1587_p5 = scmp.ne.s32.totalorder %s1573_s28, 0  ;;  %s619_s29 = scalar_lea.sflag [#allocation4], %s618_s10 }
 0x199   : > { %p848_p9 = pnand %p860_p0, %p1587_p5 }
 0x19b   : > { %p849_p2 = pneg %p848_p9 }
 0x19d   : > { %1090 = dma.done.wait (%p849_p2), %s619_s29, 896  }
 0x19e   : > { %1092 = vsyncadd (%p849_p2), %s619_s29, 4294966400  ;;  %s1588_s18 = sadd.s32 4294967294, %s1111_s24  }
 0x19f   : > { %s627_s11 = sand.u32 1, %s1588_s18  }
 0x1a0   : > { %s628_s25 = scalar_lea.sflag [#allocation10], %s627_s11 }
 0x1a1   : > { %1094 = dma.done.wait (%p849_p2), %s628_s25, 1792  }
 0x1a2   : > { %1096 = vsyncadd (%p849_p2), %s628_s25, 4294965504  ;;  %s1589_s7 = sld [smem:[#allocation17_spill]]  ;;  %p26_p11 = scmp.ge.s32.totalorder %s1216_s9, 6  }
 0x1a3   : > { %s1590_s21 = smov %s1103_s22  ;;  %s1591_s22 = smov %s1107_s23 }
 0x1a4   : > { %s1593_s24 = smov %s1216_s9  ;;  %28 = sbr.rel (!%p26_p11) target bundleno = 12 (0xc), region = 130 }
 0x1a8   : > { %s1592_s23 = smov %s1589_s7 }
 0x1a9   :  { %642 = vsyncpa [#allocation3], 1 }
 0x1aa   :  { %644 = vsyncpa [#allocation3 + $0x1], 1 }
 0x1ab   :  { %645 = vsyncpa [#allocation6], 1 }
 0x1ac   :  { %647 = vsyncpa [#allocation6 + $0x1], 1 }
 0x1ad   :  { %648 = vsyncpa [#allocation4], 1 }
 0x1ae   :  { %650 = vsyncpa [#allocation4 + $0x1], 1 }
 0x1af   :  { %651 = vsyncpa [#allocation10], 1 }
 0x1b0   :  { %653 = vsyncpa [#allocation10 + $0x1], 1 }

</bundles_post_ra>
